<compile_context>
chip_gen: v6e
topology: v6e:2x2x1
jax: 0.10.0
libtpu: 0.0.40
codegen_flags: <defaults>
</compile_context>

<pallas_src>
import functools

import numpy as np

import jax
import jax.numpy as jnp
from jax import lax
from jax.experimental import pallas as pl
from jax.experimental.pallas import tpu as pltpu

# ---- small ConvE config (consistent with the module's __init__) ----
EMBEDDING_SIZE = 32                                    # embedding_size
EMBEDDING_HEIGHT = 4                                   # embedding_height
EMBEDDING_WIDTH = EMBEDDING_SIZE // EMBEDDING_HEIGHT   # 8
NUM_FILTERS = 8
H2 = EMBEDDING_HEIGHT * 2                              # stacked image height = 8
OH = H2 - 2                                            # conv output height = 6
OW = EMBEDDING_WIDTH - 2                               # conv output width  = 6
IMG_SIZE = H2 * EMBEDDING_WIDTH                        # 64 flattened image pixels
HIDDEN_SIZE = NUM_FILTERS * OH * OW                    # 288
LN_EPS = 1e-5


def _round_up(x, m):
    return (x + m - 1) // m * m


# ---- im2col / Toeplitz index pattern for the 3x3 VALID conv (built once) ----
# conv_out[f, i, j] = sum_{dh,dw} img[i+dh, j+dw] * conv_w[f, dh, dw]
#   => W_conv[(i+dh)*8 + (j+dw), f*36 + i*6 + j] = conv_w[f, dh, dw]
_rows, _cols, _widx = [], [], []
for _f in range(NUM_FILTERS):
    for _i in range(OH):
        for _j in range(OW):
            for _dh in range(3):
                for _dw in range(3):
                    _rows.append((_i + _dh) * EMBEDDING_WIDTH + (_j + _dw))
                    _cols.append(_f * OH * OW + _i * OW + _j)
                    _widx.append(_f * 9 + _dh * 3 + _dw)
_T_ROWS = np.asarray(_rows)
_T_COLS = np.asarray(_cols)
_T_WIDX = np.asarray(_widx)


def _conv_toeplitz(conv_w):
    """(F, 3, 3) conv weights -> (64, 288) matrix so conv == x_flat @ W."""
    vals = conv_w.reshape(-1)[_T_WIDX]
    w = jnp.zeros((IMG_SIZE, HIDDEN_SIZE), conv_w.dtype)
    return w.at[_T_ROWS, _T_COLS].set(vals)


def _mish_fast(x):
    """Kernel-side mish: x*tanh(softplus(x)) == x*(p^2-1)/(p^2+1), p = 1+exp(x).

    2 EUP pushes (exp + approx reciprocal) instead of 3 (exp, log1p, tanh).
    The exp argument is clamped so p^2 stays finite; for x >= 20 the ratio is
    already 1.0 to f32 precision, so the clamp is exact in effect.
    """
    t = jnp.exp(jnp.minimum(x, 20.0))
    p = 1.0 + t
    n = p * p
    return x * (n - 1.0) * pl.reciprocal(n + 1.0, approx=True)


def _mish_ref(x):
    # exact mish for the pure-JAX reference: x * tanh(softplus(x))
    sp = jnp.log1p(jnp.exp(-jnp.abs(x))) + jnp.maximum(x, 0.0)
    return x * jnp.tanh(sp)


def _ln_1pass(v, w, b):
    """One-pass LayerNorm over the last axis (mean and E[x^2] in one sweep)."""
    mu = jnp.mean(v, axis=-1, keepdims=True)
    ex2 = jnp.mean(v * v, axis=-1, keepdims=True)
    var = jnp.maximum(ex2 - mu * mu, 0.0)
    y = (v - mu) * lax.rsqrt(var + LN_EPS)
    if w is None:
        return y
    return y * w + b


def conve_kernel(x_ref, tail_ref, wconv_ref, cbias_ref, cln_w_ref, cln_b_ref,
                 wfc_ref, fln_w_ref, fln_b_ref, out_ref, *, chunk, n_chunks):
    # Small resident operands: load once per tile, reuse across sub-chunks.
    wconv = wconv_ref[...]         # (64, 288) bf16, input-LN scale folded in
    cbias = cbias_ref[...]         # (1, 288) f32, input-LN bias pushed through conv
    wfc = wfc_ref[...]             # (288, 32) bf16
    cln_w = cln_w_ref[...]
    cln_b = cln_b_ref[...]
    fln_w = fln_w_ref[...]
    fln_b = fln_b_ref[...]

    def process(r0):
        # ---- input LayerNorm over the whole flattened (2H, W) image (64) ----
        x = x_ref[pl.ds(r0, chunk), :].astype(jnp.float32)          # (CS, 64)
        xn = _ln_1pass(x, None, None)      # affine folded into wconv / cbias
        # (dropout: identity in eval mode)

        # ---- 3x3 VALID conv as ONE MXU matmul vs im2col/Toeplitz weights ----
        conv = jnp.dot(xn.astype(jnp.bfloat16), wconv,
                       preferred_element_type=jnp.float32) + cbias   # (CS, 288)

        # ---- conv LayerNorm over 288 features, then mish ----
        cm = _mish_fast(_ln_1pass(conv, cln_w, cln_b))
        # (dropout: identity in eval mode)

        # ---- bias-free fc as a single (CS,288)@(288,32) MXU matmul ----
        h = jnp.dot(cm.astype(jnp.bfloat16), wfc,
                    preferred_element_type=jnp.float32)              # (CS, 32)

        # ---- fc LayerNorm + mish ----
        hm = _mish_fast(_ln_1pass(h, fln_w, fln_b))

        # ---- score = <features, tail_embedding> per sample (f32) ----
        tail = tail_ref[pl.ds(r0, chunk), :].astype(jnp.float32)
        out_ref[pl.ds(r0, chunk), :] = jnp.sum(hm * tail, axis=-1, keepdims=True)

    if n_chunks == 1:
        process(0)
    else:
        # Unrolled sub-chunk loop: gives the scheduler independent work so the
        # MXU matmuls of chunk i+1 overlap the LN/mish VPU/EUP work of chunk i.
        def body(c, carry):
            process(pl.multiple_of(c * chunk, chunk))
            return carry
        lax.fori_loop(0, n_chunks, body, None, unroll=True)


def _is_v7x():
    try:
        kind = jax.devices()[0].device_kind.lower()
    except Exception:
        return False
    return ("v7" in kind) or ("tpu7" in kind.replace(" ", ""))


def _choose_tiling(B, is_v7x):
    """Generation-aware batch tiling.

    v5e/v6e: 1 TensorCore -> single tile whenever the batch fits (BT <= 2048).
    v7x: 2 TensorCores, 64 MiB VMEM -> even tile count >= 2 (>= 4 when large),
         BT capped at 1024.
    """
    bt_max = 1024 if is_v7x else 2048

    def _round_bt(n):
        # bf16 x packs (16,128) per vreg -> multiple of 16; multiples of 64 for
        # larger tiles so the in-kernel 2/4-way sub-chunking divides evenly.
        return _round_up(n, 16) if n <= 64 else _round_up(n, 64)

    B = max(B, 1)
    if is_v7x and B > 32:
        want_tiles = 4 if B >= 256 else 2
    else:
        want_tiles = 1

    bt = min(_round_bt(-(-B // want_tiles)), bt_max)
    num_tiles = -(-B // bt)
    # Rebalance so padding spreads across tiles instead of one mostly-empty tile.
    bt = min(_round_bt(-(-B // num_tiles)), bt_max)
    num_tiles = -(-B // bt)
    if is_v7x and num_tiles > 1 and num_tiles % 2:
        num_tiles += 1      # even tile count for megacore load balance
    return bt, num_tiles


def conve_forward(triples, entity_embeddings, relation_embeddings, params):
    batch_shape = triples.shape[:-1]
    flat = triples.reshape(-1, 3)
    head = entity_embeddings[flat[:, 0]].astype(jnp.float32)
    tail = entity_embeddings[flat[:, 1]].astype(jnp.bfloat16)
    rel = relation_embeddings[flat[:, 2]].astype(jnp.float32)
    B = flat.shape[0]

    # Stacked (2H, W) image flattened row-major == concat([head, rel], axis=-1).
    # Batch on sublanes, 64 pixels on lanes; bf16 halves the dominant HBM read.
    x = jnp.concatenate([head, rel], axis=-1).astype(jnp.bfloat16)       # (B, 64)

    is_v7x = _is_v7x()
    BT, num_tiles = _choose_tiling(B, is_v7x)
    B_pad = BT * num_tiles
    if B_pad != B:
        x = jnp.pad(x, ((0, B_pad - B), (0, 0)))
        tail = jnp.pad(tail, ((0, B_pad - B), (0, 0)))

    # In-kernel sub-chunking (MXU <-> VPU/EUP overlap).
    if BT >= 256 and BT % 64 == 0:
        n_chunks = 4
    elif BT >= 128 and BT % 32 == 0:
        n_chunks = 2
    else:
        n_chunks = 1
    chunk = BT // n_chunks

    # ---- parameter re-layout; input-LN affine folded into the conv matmul ----
    f32 = jnp.float32
    w_toep = _conv_toeplitz(params["conv_w"].astype(f32))                # (64, 288)
    in_w = params["in_ln_w"].reshape(IMG_SIZE).astype(f32)
    in_b = params["in_ln_b"].reshape(1, IMG_SIZE).astype(f32)
    wconv = (w_toep * in_w[:, None]).astype(jnp.bfloat16)                # (64, 288)
    cbias = jnp.dot(in_b, w_toep, precision=lax.Precision.HIGHEST)       # (1, 288) f32
    wfc = params["fc_w"].T.astype(jnp.bfloat16)                          # (288, 32)
    cln_w = params["conv_ln_w"].reshape(1, HIDDEN_SIZE).astype(f32)
    cln_b = params["conv_ln_b"].reshape(1, HIDDEN_SIZE).astype(f32)
    fln_w = params["fc_ln_w"].reshape(1, EMBEDDING_SIZE).astype(f32)
    fln_b = params["fc_ln_b"].reshape(1, EMBEDDING_SIZE).astype(f32)

    kernel = functools.partial(conve_kernel, chunk=chunk, n_chunks=n_chunks)

    out = pl.pallas_call(
        kernel,
        out_shape=jax.ShapeDtypeStruct((B_pad, 1), jnp.float32),
        grid=(num_tiles,),
        in_specs=[
            pl.BlockSpec((BT, IMG_SIZE), lambda b: (b, 0)),              # x (bf16)
            pl.BlockSpec((BT, EMBEDDING_SIZE), lambda b: (b, 0)),        # tail (bf16)
            pl.BlockSpec((IMG_SIZE, HIDDEN_SIZE), lambda b: (0, 0)),     # conv Toeplitz
            pl.BlockSpec((1, HIDDEN_SIZE), lambda b: (0, 0)),            # conv bias
            pl.BlockSpec((1, HIDDEN_SIZE), lambda b: (0, 0)),            # conv_ln_w
            pl.BlockSpec((1, HIDDEN_SIZE), lambda b: (0, 0)),            # conv_ln_b
            pl.BlockSpec((HIDDEN_SIZE, EMBEDDING_SIZE), lambda b: (0, 0)),  # fc weight
            pl.BlockSpec((1, EMBEDDING_SIZE), lambda b: (0, 0)),         # fc_ln_w
            pl.BlockSpec((1, EMBEDDING_SIZE), lambda b: (0, 0)),         # fc_ln_b
        ],
        out_specs=pl.BlockSpec((BT, 1), lambda b: (b, 0)),
        compiler_params=pltpu.CompilerParams(
            # TODO(synk): if a v7x trace shows this axis is not megacore-sharded,
            # switch it to pltpu.CORE_PARALLEL.
            dimension_semantics=("parallel",),
            vmem_limit_bytes=(32 if is_v7x else 64) * 1024 * 1024),
    )(x, tail, wconv, cbias, cln_w, cln_b, wfc, fln_w, fln_b)

    scores = out.reshape(-1)[:B]
    return scores.reshape(batch_shape)


def conve_reference(triples, entity_embeddings, relation_embeddings, params):
    """Pure-JAX f32 reference mirroring the PyTorch forward (eval mode)."""
    batch_shape = triples.shape[:-1]
    flat = triples.reshape(-1, 3)
    head = entity_embeddings[flat[:, 0]]
    tail = entity_embeddings[flat[:, 1]]
    rel = relation_embeddings[flat[:, 2]]
    B = flat.shape[0]

    head_img = head.reshape(B, 1, EMBEDDING_HEIGHT, EMBEDDING_WIDTH)
    rel_img = rel.reshape(B, 1, EMBEDDING_HEIGHT, EMBEDDING_WIDTH)
    x = jnp.concatenate([head_img, rel_img], axis=2)                     # (B,1,2H,W)

    def ln(v, axes, w, b):
        m = jnp.mean(v, axis=axes, keepdims=True)
        var = jnp.mean((v - m) ** 2, axis=axes, keepdims=True)
        return (v - m) / jnp.sqrt(var + LN_EPS) * w + b

    x = ln(x, (1, 2, 3), params["in_ln_w"][None, None], params["in_ln_b"][None, None])
    y = lax.conv_general_dilated(
        x, params["conv_w"][:, None, :, :], window_strides=(1, 1), padding="VALID",
        dimension_numbers=("NCHW", "OIHW", "NCHW"), precision=lax.Precision.HIGHEST)
    y = ln(y, (1, 2, 3), params["conv_ln_w"][None], params["conv_ln_b"][None])
    y = _mish_ref(y)
    h = jnp.dot(y.reshape(B, HIDDEN_SIZE), params["fc_w"].T,
                precision=lax.Precision.HIGHEST)
    h = ln(h, (-1,), params["fc_ln_w"][None], params["fc_ln_b"][None])
    h = _mish_ref(h)
    scores = jnp.sum(h * tail, axis=-1)
    return scores.reshape(batch_shape)


if __name__ == "__main__":
    key = jax.random.PRNGKey(0)
    ks = jax.random.split(key, 10)

    num_entities, num_relations = 20, 6
    ent_emb = 0.5 * jax.random.normal(ks[0], (num_entities, EMBEDDING_SIZE), jnp.float32)
    rel_emb = 0.5 * jax.random.normal(ks[1], (num_relations, EMBEDDING_SIZE), jnp.float32)

    # deterministic kaiming-uniform-like init for conv / fc, torch-default-ish LN params
    conv_bound = (2.0 ** 0.5) * (3.0 / 9.0) ** 0.5
    fc_bound = (2.0 ** 0.5) * (3.0 / HIDDEN_SIZE) ** 0.5
    params = {
        "conv_w": jax.random.uniform(ks[2], (NUM_FILTERS, 3, 3), jnp.float32,
                                     -conv_bound, conv_bound),
        "fc_w": jax.random.uniform(ks[3], (EMBEDDING_SIZE, HIDDEN_SIZE), jnp.float32,
                                   -fc_bound, fc_bound),
        "in_ln_w": 1.0 + 0.1 * jax.random.normal(ks[4], (H2, EMBEDDING_WIDTH), jnp.float32),
        "in_ln_b": 0.1 * jax.random.normal(ks[5], (H2, EMBEDDING_WIDTH), jnp.float32),
        "conv_ln_w": 1.0 + 0.1 * jax.random.normal(ks[6], (NUM_FILTERS, OH, OW), jnp.float32),
        "conv_ln_b": 0.1 * jax.random.normal(ks[7], (NUM_FILTERS, OH, OW), jnp.float32),
        "fc_ln_w": 1.0 + 0.1 * jax.random.normal(ks[8], (EMBEDDING_SIZE,), jnp.float32),
        "fc_ln_b": 0.1 * jax.random.normal(ks[9], (EMBEDDING_SIZE,), jnp.float32),
    }

    def run_case(batch_shape, seed):
        k1, k2, k3 = jax.random.split(jax.random.PRNGKey(seed), 3)
        heads = jax.random.randint(k1, batch_shape, 0, num_entities)
        tails = jax.random.randint(k2, batch_shape, 0, num_entities)
        rels = jax.random.randint(k3, batch_shape, 0, num_relations)
        triples = jnp.stack([heads, tails, rels], axis=-1).astype(jnp.int32)

        scores = jax.block_until_ready(conve_forward(triples, ent_emb, rel_emb, params))
        ref = jax.block_until_ready(conve_reference(triples, ent_emb, rel_emb, params))

        assert scores.shape == batch_shape
        # Kernel uses bf16 MXU operands (f32 accumulation / LN stats) vs an f32
        # reference, so check the max error against the score scale.
        err = float(jnp.max(jnp.abs(scores - ref)))
        scale = max(float(jnp.max(jnp.abs(ref))), 1.0)
        if not err <= 5e-2 * scale:
            raise AssertionError(
                f"Pallas/ref mismatch for batch_shape={batch_shape} "
                f"(err={err}, scale={scale})")

    run_case((2, 4), seed=1)     # tiny: single tile, single in-kernel chunk
    run_case((3, 700), seed=2)   # larger: multi-tile grid + unrolled sub-chunk loop
    print("KERNEL_OK")
</pallas_src>

<mosaic_0001>
module attributes {stable_mosaic.version = 11 : i64} {
  func.func @conve_kernel(%arg0: i32, %arg1: memref<16x64xbf16, #tpu.memory_space<vmem>>, %arg2: memref<16x32xbf16, #tpu.memory_space<vmem>>, %arg3: memref<64x288xbf16, #tpu.memory_space<vmem>>, %arg4: memref<1x288xf32, #tpu.memory_space<vmem>>, %arg5: memref<1x288xf32, #tpu.memory_space<vmem>>, %arg6: memref<1x288xf32, #tpu.memory_space<vmem>>, %arg7: memref<288x32xbf16, #tpu.memory_space<vmem>>, %arg8: memref<1x32xf32, #tpu.memory_space<vmem>>, %arg9: memref<1x32xf32, #tpu.memory_space<vmem>>, %arg10: memref<16x1xf32, #tpu.memory_space<vmem>>) attributes {dimension_semantics = [#tpu.dimension_semantics<parallel>], iteration_bounds = array<i64: 1>, scalar_prefetch = 0 : i64, scratch_operands = 0 : i64, tpu.core_type = #tpu.core_type<tc>, window_params = [{transform_indices = @transform_0, window_bounds = array<i64: 16, 64>}, {transform_indices = @transform_1, window_bounds = array<i64: 16, 32>}, {pipeline_mode = #tpu.pipeline_mode<synchronous>, transform_indices = @transform_2, window_bounds = array<i64: 64, 288>}, {pipeline_mode = #tpu.pipeline_mode<synchronous>, transform_indices = @transform_3, window_bounds = array<i64: 1, 288>}, {pipeline_mode = #tpu.pipeline_mode<synchronous>, transform_indices = @transform_4, window_bounds = array<i64: 1, 288>}, {pipeline_mode = #tpu.pipeline_mode<synchronous>, transform_indices = @transform_5, window_bounds = array<i64: 1, 288>}, {pipeline_mode = #tpu.pipeline_mode<synchronous>, transform_indices = @transform_6, window_bounds = array<i64: 288, 32>}, {pipeline_mode = #tpu.pipeline_mode<synchronous>, transform_indices = @transform_7, window_bounds = array<i64: 1, 32>}, {pipeline_mode = #tpu.pipeline_mode<synchronous>, transform_indices = @transform_8, window_bounds = array<i64: 1, 32>}, {transform_indices = @transform_9, window_bounds = array<i64: 16, 1>}]} {
    %c0 = arith.constant 0 : index
    %c0_0 = arith.constant 0 : index
    %0 = vector.load %arg3[%c0, %c0_0] : memref<64x288xbf16, #tpu.memory_space<vmem>>, vector<64x288xbf16>
    %c0_1 = arith.constant 0 : index
    %c0_2 = arith.constant 0 : index
    %1 = vector.load %arg4[%c0_1, %c0_2] : memref<1x288xf32, #tpu.memory_space<vmem>>, vector<1x288xf32>
    %c0_3 = arith.constant 0 : index
    %c0_4 = arith.constant 0 : index
    %2 = vector.load %arg7[%c0_3, %c0_4] : memref<288x32xbf16, #tpu.memory_space<vmem>>, vector<288x32xbf16>
    %c0_5 = arith.constant 0 : index
    %c0_6 = arith.constant 0 : index
    %3 = vector.load %arg5[%c0_5, %c0_6] : memref<1x288xf32, #tpu.memory_space<vmem>>, vector<1x288xf32>
    %c0_7 = arith.constant 0 : index
    %c0_8 = arith.constant 0 : index
    %4 = vector.load %arg6[%c0_7, %c0_8] : memref<1x288xf32, #tpu.memory_space<vmem>>, vector<1x288xf32>
    %c0_9 = arith.constant 0 : index
    %c0_10 = arith.constant 0 : index
    %5 = vector.load %arg8[%c0_9, %c0_10] : memref<1x32xf32, #tpu.memory_space<vmem>>, vector<1x32xf32>
    %c0_11 = arith.constant 0 : index
    %c0_12 = arith.constant 0 : index
    %6 = vector.load %arg9[%c0_11, %c0_12] : memref<1x32xf32, #tpu.memory_space<vmem>>, vector<1x32xf32>
    %c0_13 = arith.constant 0 : index
    %c0_14 = arith.constant 0 : index
    %7 = vector.load %arg1[%c0_13, %c0_14] : memref<16x64xbf16, #tpu.memory_space<vmem>>, vector<16x64xbf16>
    %8 = arith.extf %7 : vector<16x64xbf16> to vector<16x64xf32>
    %cst = arith.constant dense<0.000000e+00> : vector<16xf32>
    %9 = vector.multi_reduction <add>, %8, %cst [1] : vector<16x64xf32> to vector<16xf32>
    %10 = vector.shape_cast %9 : vector<16xf32> to vector<16x1xf32>
    %cst_15 = arith.constant 6.400000e+01 : f32
    %11 = vector.broadcast %cst_15 : f32 to vector<16x1xf32>
    %12 = arith.divf %10, %11 : vector<16x1xf32>
    %13 = arith.mulf %8, %8 : vector<16x64xf32>
    %cst_16 = arith.constant dense<0.000000e+00> : vector<16xf32>
    %14 = vector.multi_reduction <add>, %13, %cst_16 [1] : vector<16x64xf32> to vector<16xf32>
    %15 = vector.shape_cast %14 : vector<16xf32> to vector<16x1xf32>
    %cst_17 = arith.constant 6.400000e+01 : f32
    %16 = vector.broadcast %cst_17 : f32 to vector<16x1xf32>
    %17 = arith.divf %15, %16 : vector<16x1xf32>
    %18 = arith.mulf %12, %12 : vector<16x1xf32>
    %19 = arith.subf %17, %18 : vector<16x1xf32>
    %cst_18 = arith.constant 0.000000e+00 : f32
    %20 = vector.broadcast %cst_18 : f32 to vector<16x1xf32>
    %21 = arith.maximumf %19, %20 : vector<16x1xf32>
    %22 = vector.broadcast %12 : vector<16x1xf32> to vector<16x64xf32>
    %23 = arith.subf %8, %22 : vector<16x64xf32>
    %cst_19 = arith.constant 9.99999974E-6 : f32
    %24 = vector.broadcast %cst_19 : f32 to vector<16x1xf32>
    %25 = arith.addf %21, %24 : vector<16x1xf32>
    %26 = math.rsqrt %25 : vector<16x1xf32>
    %27 = vector.broadcast %26 : vector<16x1xf32> to vector<16x64xf32>
    %28 = arith.mulf %23, %27 : vector<16x64xf32>
    %29 = arith.truncf %28 : vector<16x64xf32> to vector<16x64xbf16>
    %cst_20 = arith.constant dense<0.000000e+00> : vector<16x288xf32>
    %30 = tpu.matmul %29, %0, %cst_20 {dimension_numbers = #tpu.dot_dimension_numbers<[1], [0], [0], [1], [0, 0, 1, 1], [], []>} : vector<16x64xbf16>, vector<64x288xbf16>, vector<16x288xf32> -> vector<16x288xf32>
    %31 = vector.broadcast %1 : vector<1x288xf32> to vector<16x288xf32>
    %32 = arith.addf %30, %31 : vector<16x288xf32>
    %cst_21 = arith.constant dense<0.000000e+00> : vector<16xf32>
    %33 = vector.multi_reduction <add>, %32, %cst_21 [1] : vector<16x288xf32> to vector<16xf32>
    %34 = vector.shape_cast %33 : vector<16xf32> to vector<16x1xf32>
    %cst_22 = arith.constant 2.880000e+02 : f32
    %35 = vector.broadcast %cst_22 : f32 to vector<16x1xf32>
    %36 = arith.divf %34, %35 : vector<16x1xf32>
    %37 = arith.mulf %32, %32 : vector<16x288xf32>
    %cst_23 = arith.constant dense<0.000000e+00> : vector<16xf32>
    %38 = vector.multi_reduction <add>, %37, %cst_23 [1] : vector<16x288xf32> to vector<16xf32>
    %39 = vector.shape_cast %38 : vector<16xf32> to vector<16x1xf32>
    %cst_24 = arith.constant 2.880000e+02 : f32
    %40 = vector.broadcast %cst_24 : f32 to vector<16x1xf32>
    %41 = arith.divf %39, %40 : vector<16x1xf32>
    %42 = arith.mulf %36, %36 : vector<16x1xf32>
    %43 = arith.subf %41, %42 : vector<16x1xf32>
    %cst_25 = arith.constant 0.000000e+00 : f32
    %44 = vector.broadcast %cst_25 : f32 to vector<16x1xf32>
    %45 = arith.maximumf %43, %44 : vector<16x1xf32>
    %46 = vector.broadcast %36 : vector<16x1xf32> to vector<16x288xf32>
    %47 = arith.subf %32, %46 : vector<16x288xf32>
    %cst_26 = arith.constant 9.99999974E-6 : f32
    %48 = vector.broadcast %cst_26 : f32 to vector<16x1xf32>
    %49 = arith.addf %45, %48 : vector<16x1xf32>
    %50 = math.rsqrt %49 : vector<16x1xf32>
    %51 = vector.broadcast %50 : vector<16x1xf32> to vector<16x288xf32>
    %52 = arith.mulf %47, %51 : vector<16x288xf32>
    %53 = vector.broadcast %3 : vector<1x288xf32> to vector<16x288xf32>
    %54 = arith.mulf %52, %53 : vector<16x288xf32>
    %55 = vector.broadcast %4 : vector<1x288xf32> to vector<16x288xf32>
    %56 = arith.addf %54, %55 : vector<16x288xf32>
    %cst_27 = arith.constant 2.000000e+01 : f32
    %57 = vector.broadcast %cst_27 : f32 to vector<16x288xf32>
    %58 = arith.minimumf %56, %57 : vector<16x288xf32>
    %59 = math.exp %58 : vector<16x288xf32>
    %cst_28 = arith.constant 1.000000e+00 : f32
    %60 = vector.broadcast %cst_28 : f32 to vector<16x288xf32>
    %61 = arith.addf %60, %59 : vector<16x288xf32>
    %62 = arith.mulf %61, %61 : vector<16x288xf32>
    %cst_29 = arith.constant 1.000000e+00 : f32
    %63 = vector.broadcast %cst_29 : f32 to vector<16x288xf32>
    %64 = arith.subf %62, %63 : vector<16x288xf32>
    %65 = arith.mulf %56, %64 : vector<16x288xf32>
    %cst_30 = arith.constant 1.000000e+00 : f32
    %66 = vector.broadcast %cst_30 : f32 to vector<16x288xf32>
    %67 = arith.addf %62, %66 : vector<16x288xf32>
    %68 = tpu.reciprocal %67 {approx = true} : vector<16x288xf32> -> vector<16x288xf32>
    %69 = arith.mulf %65, %68 : vector<16x288xf32>
    %70 = arith.truncf %69 : vector<16x288xf32> to vector<16x288xbf16>
    %cst_31 = arith.constant dense<0.000000e+00> : vector<16x32xf32>
    %71 = tpu.matmul %70, %2, %cst_31 {dimension_numbers = #tpu.dot_dimension_numbers<[1], [0], [0], [1], [0, 0, 1, 1], [], []>} : vector<16x288xbf16>, vector<288x32xbf16>, vector<16x32xf32> -> vector<16x32xf32>
    %cst_32 = arith.constant dense<0.000000e+00> : vector<16xf32>
    %72 = vector.multi_reduction <add>, %71, %cst_32 [1] : vector<16x32xf32> to vector<16xf32>
    %73 = vector.shape_cast %72 : vector<16xf32> to vector<16x1xf32>
    %cst_33 = arith.constant 3.200000e+01 : f32
    %74 = vector.broadcast %cst_33 : f32 to vector<16x1xf32>
    %75 = arith.divf %73, %74 : vector<16x1xf32>
    %76 = arith.mulf %71, %71 : vector<16x32xf32>
    %cst_34 = arith.constant dense<0.000000e+00> : vector<16xf32>
    %77 = vector.multi_reduction <add>, %76, %cst_34 [1] : vector<16x32xf32> to vector<16xf32>
    %78 = vector.shape_cast %77 : vector<16xf32> to vector<16x1xf32>
    %cst_35 = arith.constant 3.200000e+01 : f32
    %79 = vector.broadcast %cst_35 : f32 to vector<16x1xf32>
    %80 = arith.divf %78, %79 : vector<16x1xf32>
    %81 = arith.mulf %75, %75 : vector<16x1xf32>
    %82 = arith.subf %80, %81 : vector<16x1xf32>
    %cst_36 = arith.constant 0.000000e+00 : f32
    %83 = vector.broadcast %cst_36 : f32 to vector<16x1xf32>
    %84 = arith.maximumf %82, %83 : vector<16x1xf32>
    %85 = vector.broadcast %75 : vector<16x1xf32> to vector<16x32xf32>
    %86 = arith.subf %71, %85 : vector<16x32xf32>
    %cst_37 = arith.constant 9.99999974E-6 : f32
    %87 = vector.broadcast %cst_37 : f32 to vector<16x1xf32>
    %88 = arith.addf %84, %87 : vector<16x1xf32>
    %89 = math.rsqrt %88 : vector<16x1xf32>
    %90 = vector.broadcast %89 : vector<16x1xf32> to vector<16x32xf32>
    %91 = arith.mulf %86, %90 : vector<16x32xf32>
    %92 = vector.broadcast %5 : vector<1x32xf32> to vector<16x32xf32>
    %93 = arith.mulf %91, %92 : vector<16x32xf32>
    %94 = vector.broadcast %6 : vector<1x32xf32> to vector<16x32xf32>
    %95 = arith.addf %93, %94 : vector<16x32xf32>
    %cst_38 = arith.constant 2.000000e+01 : f32
    %96 = vector.broadcast %cst_38 : f32 to vector<16x32xf32>
    %97 = arith.minimumf %95, %96 : vector<16x32xf32>
    %98 = math.exp %97 : vector<16x32xf32>
    %cst_39 = arith.constant 1.000000e+00 : f32
    %99 = vector.broadcast %cst_39 : f32 to vector<16x32xf32>
    %100 = arith.addf %99, %98 : vector<16x32xf32>
    %101 = arith.mulf %100, %100 : vector<16x32xf32>
    %cst_40 = arith.constant 1.000000e+00 : f32
    %102 = vector.broadcast %cst_40 : f32 to vector<16x32xf32>
    %103 = arith.subf %101, %102 : vector<16x32xf32>
    %104 = arith.mulf %95, %103 : vector<16x32xf32>
    %cst_41 = arith.constant 1.000000e+00 : f32
    %105 = vector.broadcast %cst_41 : f32 to vector<16x32xf32>
    %106 = arith.addf %101, %105 : vector<16x32xf32>
    %107 = tpu.reciprocal %106 {approx = true} : vector<16x32xf32> -> vector<16x32xf32>
    %108 = arith.mulf %104, %107 : vector<16x32xf32>
    %c0_42 = arith.constant 0 : index
    %c0_43 = arith.constant 0 : index
    %109 = vector.load %arg2[%c0_42, %c0_43] : memref<16x32xbf16, #tpu.memory_space<vmem>>, vector<16x32xbf16>
    %110 = arith.extf %109 : vector<16x32xbf16> to vector<16x32xf32>
    %111 = arith.mulf %108, %110 : vector<16x32xf32>
    %cst_44 = arith.constant dense<0.000000e+00> : vector<16xf32>
    %112 = vector.multi_reduction <add>, %111, %cst_44 [1] : vector<16x32xf32> to vector<16xf32>
    %113 = vector.shape_cast %112 : vector<16xf32> to vector<16x1xf32>
    %c0_45 = arith.constant 0 : index
    %c0_46 = arith.constant 0 : index
    %114 = vector.load %arg10[%c0_45, %c0_46] : memref<16x1xf32, #tpu.memory_space<vmem>>, vector<16x1xf32>
    tpu.vector_store %arg10[%c0_45, %c0_46], %113 {strides = array<i32>} : memref<16x1xf32, #tpu.memory_space<vmem>>, vector<16x1xf32>,
    return
  }
  func.func @transform_0(%arg0: i32) -> (i32, i32) {
    %c0_i32 = arith.constant 0 : i32
    %c0_i32_0 = arith.constant 0 : i32
    return %arg0, %c0_i32 : i32, i32
  }
  func.func @transform_1(%arg0: i32) -> (i32, i32) {
    %c0_i32 = arith.constant 0 : i32
    %c0_i32_0 = arith.constant 0 : i32
    return %arg0, %c0_i32 : i32, i32
  }
  func.func @transform_2(%arg0: i32) -> (i32, i32) {
    %c0_i32 = arith.constant 0 : i32
    %c0_i32_0 = arith.constant 0 : i32
    %c0_i32_1 = arith.constant 0 : i32
    return %c0_i32, %c0_i32_0 : i32, i32
  }
  func.func @transform_3(%arg0: i32) -> (i32, i32) {
    %c0_i32 = arith.constant 0 : i32
    %c0_i32_0 = arith.constant 0 : i32
    %c0_i32_1 = arith.constant 0 : i32
    return %c0_i32, %c0_i32_0 : i32, i32
  }
  func.func @transform_4(%arg0: i32) -> (i32, i32) {
    %c0_i32 = arith.constant 0 : i32
    %c0_i32_0 = arith.constant 0 : i32
    %c0_i32_1 = arith.constant 0 : i32
    return %c0_i32, %c0_i32_0 : i32, i32
  }
  func.func @transform_5(%arg0: i32) -> (i32, i32) {
    %c0_i32 = arith.constant 0 : i32
    %c0_i32_0 = arith.constant 0 : i32
    %c0_i32_1 = arith.constant 0 : i32
    return %c0_i32, %c0_i32_0 : i32, i32
  }
  func.func @transform_6(%arg0: i32) -> (i32, i32) {
    %c0_i32 = arith.constant 0 : i32
    %c0_i32_0 = arith.constant 0 : i32
    %c0_i32_1 = arith.constant 0 : i32
    return %c0_i32, %c0_i32_0 : i32, i32
  }
  func.func @transform_7(%arg0: i32) -> (i32, i32) {
    %c0_i32 = arith.constant 0 : i32
    %c0_i32_0 = arith.constant 0 : i32
    %c0_i32_1 = arith.constant 0 : i32
    return %c0_i32, %c0_i32_0 : i32, i32
  }
  func.func @transform_8(%arg0: i32) -> (i32, i32) {
    %c0_i32 = arith.constant 0 : i32
    %c0_i32_0 = arith.constant 0 : i32
    %c0_i32_1 = arith.constant 0 : i32
    return %c0_i32, %c0_i32_0 : i32, i32
  }
  func.func @transform_9(%arg0: i32) -> (i32, i32) {
    %c0_i32 = arith.constant 0 : i32
    %c0_i32_0 = arith.constant 0 : i32
    return %arg0, %c0_i32 : i32, i32
  }
}

</mosaic_0001>

<bundles_post_ra>
// kernel: tpu_custom_call.1
= control target key start
LH: loop header
LB: loop body
LE: loop exit
PB: predicated region body
PF: predicated region fallthrough
CT: control target
= control target key end

     0   :  { %vm94_vm0 = vcmask 523264   ;;  %v920_v12 = vmov 0   ;;  %v921_v18 = vmov 0.0   ;;  %vm922_vm1 = vmmov 0   ;;  %s1182_s0 = inlined_call_operand.vmem [shape: bf16[16,64], index: 0, kind: input, shape index: {}]   ;;  %s1183_s2 = inlined_call_operand.vmem [shape: bf16[64,288], index: 2, kind: input, shape index: {}]   ;;  %s1184_s3 = inlined_call_operand.vmem [shape: f32[1,288], index: 3, kind: input, shape index: {}]   ;;  %s1185_s6 = inlined_call_operand.vmem [shape: bf16[288,32], index: 6, kind: input, shape index: {}]   ;;  %s1186_s4 = inlined_call_operand.vmem [shape: f32[1,288], index: 4, kind: input, shape index: {}]   ;;  %s1187_s5 = inlined_call_operand.vmem [shape: f32[1,288], index: 5, kind: input, shape index: {}]   ;;  %s1188_s7 = inlined_call_operand.vmem [shape: f32[1,32], index: 7, kind: input, shape index: {}]   ;;  %s1189_s8 = inlined_call_operand.vmem [shape: f32[1,32], index: 8, kind: input, shape index: {}]   ;;  %s1190_s1 = inlined_call_operand.vmem [shape: bf16[16,32], index: 1, kind: input, shape index: {}]   ;;  %s1191_s9 = inlined_call_operand.vmem [shape: f32[16,1], index: 9, kind: output, shape index: {}]  }
   0x1   :  { %v782_v0 = vld [vmem:[%s1182_s0] sm:$0xff]   ;;  %v842_v9 = vld [vmem:[%s1183_s2 + $0x4c] ss:$12 sps:$4 sm:$0xff]   ;;  %v844_v10 = vld [vmem:[%s1183_s2 + $0x48] ss:$12 sps:$4 sm:$0xff]   ;;  %244 = vmatprep.mubr.bf16.mxu1 %v920_v12  ;;  %v130_v46 = vlaneseq  ;;  %vm297_vm2 = vcmask 261120  }
   0x2   :  { %v783_v1 = vunpack.c.l.bf16 %v782_v0  ;;  %v784_v2 = vunpack.c.h.bf16 %v782_v0  ;;  %220 = vmatprep.subr.bf16.mxu1 %v842_v9  ;;  %v845_v11 = vld [vmem:[%s1183_s2 + $0x34] ss:$12 sps:$4 sm:$0xff]   ;;  %v847_v13 = vld [vmem:[%s1183_s2 + $0x30] ss:$12 sps:$4 sm:$0xff]   ;;  %v850_v15 = vld [vmem:[%s1183_s2 + $0x18] ss:$12 sps:$4 sm:$0xff]  }
   0x3   :  { %221 = vmatpush1.bf16.msra.mxu1 %v844_v10  ;;  %v848_v14 = vld [vmem:[%s1183_s2 + $0x1c] ss:$12 sps:$4 sm:$0xff]   ;;  %v851_v16 = vld [vmem:[%s1183_s2 + $0x4] ss:$12 sps:$4 sm:$0xff]   ;;  %v853_v17 = vld [vmem:[%s1183_s2] ss:$12 sps:$4 sm:$0xff]  }
   0x4   :  { %v95_v3 = vsel %vm94_vm0, %v783_v1, 0.0  ;;  %v104_v4 = vmul.f32 %v783_v1, %v783_v1  ;;  %v105_v5 = vmul.f32 %v784_v2, %v784_v2  ;;  %v98_v7 = vsel %vm94_vm0, %v784_v2, 0.0  ;;  %222 = vmatprep.subr.bf16.mxu1 %v845_v11  ;;  %v854_v41 = vld [vmem:[%s1183_s2 + $0x50] ss:$12 sps:$4 sm:$0xff]   ;;  %v855_v43 = vld [vmem:[%s1183_s2 + $0x38] ss:$12 sps:$4 sm:$0xff]  }
   0x5   :  { %96 = vadd.xlane.f32.xlu0 %v95_v3  ;;  %v856_v44 = vld [vmem:[%s1183_s2 + $0x20] ss:$12 sps:$4 sm:$0xff]   ;;  %v857_v45 = vld [vmem:[%s1183_s2 + $0x8] ss:$12 sps:$4 sm:$0xff]   ;;  %v131_v48 = vshrl.u32 %v130_v46, 7  ;;  %vm731_vm3 = vcmask 7168  }
   0x6   :  { %v106_v6 = vsel %vm94_vm0, %v104_v4, 0.0  ;;  %v109_v8 = vsel %vm94_vm0, %v105_v5, 0.0  ;;  %v49_v52 = vld [vmem:[%s1184_s3] sm:$0x7] }
   0x7   :  { %107 = vadd.xlane.f32.xlu1 %v106_v6  ;;  %223 = vmatpush1.bf16.msra.mxu1 %v847_v13  ;;  %v1025_v49 = vsub.s32 1, %v131_v48  ;;  %v1027_v51 = vsub.s32 0, %v131_v48  ;;  %v1032_v53 = vsub.s32 2, %v131_v48 }
   0x8   :  { %224 = vmatprep.subr.bf16.mxu1 %v848_v14 }
   0x9   :  { %99 = vadd.xlane.f32.xlu0 %v98_v7  ;;  %v137_v54 = vrot.slane %v49_v52, %v1025_v49  ;;  %v133_v56 = vrot.slane %v49_v52, %v1027_v51  ;;  %v141_v57 = vrot.slane %v49_v52, %v1032_v53 }
   0xb   :  { %110 = vadd.xlane.f32.xlu1 %v109_v8  ;;  %225 = vmatpush1.bf16.msra.mxu1 %v850_v15 }
   0xc   :  { %226 = vmatprep.subr.bf16.mxu1 %v851_v16 }
   0xf   :  { %227 = vmatpush1.bf16.msra.mxu1 %v853_v17 }
  0x10   :  { %819 = vmatprep.subr.bf16.mxu1 %v921_v18 }
  0x8e   :  { %v97_v19 = vpop.xlane.xlu0 %96 }
  0x8f   :  { %v102_v20 = vmul.f32 0.015625, %v97_v19 }
  0x90   :  { %v108_v21 = vpop.xlane.xlu1 %107 }
  0x91   :  { %v114_v22 = vmul.f32 %v102_v20, %v102_v20  ;;  %v112_v23 = vmul.f32 0.015625, %v108_v21  ;;  %v120_v36 = vsub.f32 %v783_v1, %v102_v20 }
  0x92   :  { %v100_v24 = vpop.xlane.xlu0 %99 }
  0x93   :  { %v116_v25 = vsub.f32 %v112_v23, %v114_v22  ;;  %v103_v26 = vmul.f32 0.015625, %v100_v24  ;;  %v858_v24 = vld [vmem:[%s1185_s6 + $0x78] sm:$0xff]  }
  0x94   :  { %v111_v27 = vpop.xlane.xlu1 %110  ;;  %794 = vmatprep.subr.bf16.mxu0 %v858_v24 }
  0x95   :  { %v118_v28 = vmax.f32 %v116_v25, 0.0  ;;  %v115_v29 = vmul.f32 %v103_v26, %v103_v26  ;;  %v113_v30 = vmul.f32 0.015625, %v111_v27  ;;  %v121_v37 = vsub.f32 %v784_v2, %v103_v26  ;;  %v859_v25 = vld [vmem:[%s1185_s6 + $0x38] sm:$0xff]   ;;  %v860_v26 = vld [vmem:[%s1185_s6 + $0x70] sm:$0xff]  }
  0x96   :  { %795 = vmatpush3.bf16.msra.mxu0 %v859_v25  ;;  %v861_v27 = vld [vmem:[%s1185_s6 + $0x30] sm:$0xff]  }
  0x97   :  { %v122_v31 = vadd.f32 1e-05, %v118_v28  ;;  %v117_v32 = vsub.f32 %v113_v30, %v115_v29  ;;  %796 = vmatprep.subr.bf16.mxu0 %v860_v26  ;;  %v862_v28 = vld [vmem:[%s1185_s6 + $0x68] sm:$0xff]   ;;  %v864_v30 = vld [vmem:[%s1185_s6 + $0x60] sm:$0xff]  }
  0x98   :  { %v863_v29 = vld [vmem:[%s1185_s6 + $0x28] sm:$0xff]  }
  0x99   :  { %v119_v33 = vmax.f32 %v117_v32, 0.0  ;;  %876 = vrsqrt.f32 %v122_v31  ;;  %v865_v31 = vld [vmem:[%s1185_s6 + $0x20] sm:$0xff]   ;;  %v866_v32 = vld [vmem:[%s1185_s6 + $0x58] sm:$0xff]  }
  0x9a   :  { %797 = vmatpush3.bf16.msra.mxu0 %v861_v27 }
  0x9b   :  { %v123_v34 = vadd.f32 1e-05, %v119_v33  ;;  %798 = vmatprep.subr.bf16.mxu0 %v862_v28  ;;  %v871_v33 = vld [vmem:[%s1185_s6 + $0x88] sm:$0xff]  }
  0x9d   :  { %878 = vrsqrt.f32 %v123_v34  ;;  %v867_v34 = vld [vmem:[%s1185_s6 + $0x18] sm:$0xff]  }
  0x9e   :  { %799 = vmatpush3.bf16.msra.mxu0 %v863_v29 }
  0x9f   :  { %800 = vmatprep.subr.bf16.mxu0 %v864_v30 }
  0xa2   :  { %801 = vmatpush3.bf16.msra.mxu0 %v865_v31 }
  0xa3   :  { %802 = vmatprep.subr.bf16.mxu0 %v866_v32 }
  0xa6   :  { %v877_v35 = vpop.eup %876  ;;  %803 = vmatpush3.bf16.msra.mxu0 %v867_v34 }
  0xa7   :  { %v126_v39 = vmul.f32 %v877_v35, %v120_v36  ;;  %v868_v35 = vld [vmem:[%s1185_s6 + $0x50] sm:$0xff]   ;;  %v874_v36 = vld [vmem:[%s1185_s6 + $0x80] sm:$0xff]  }
  0xa8   :  { %804 = vmatprep.subr.bf16.mxu0 %v868_v35 }
  0xaa   :  { %v879_v38 = vpop.eup %878 }
  0xab   :  { %v127_v40 = vmul.f32 %v879_v38, %v121_v37  ;;  %v869_v37 = vld [vmem:[%s1185_s6 + $0x10] sm:$0xff]   ;;  %v870_v38 = vld [vmem:[%s1185_s6 + $0x48] sm:$0xff]  }
  0xac   :  { %805 = vmatpush3.bf16.msra.mxu0 %v869_v37 }
  0xad   :  { %v128_v42 = vpack.c.bf16 %v127_v40, %v126_v39  ;;  %806 = vmatprep.subr.bf16.mxu0 %v870_v38  ;;  %v873_v39 = vld [vmem:[%s1185_s6 + $0x40] sm:$0xff]  }
  0xae   :  { %v875_v40 = vld [vmem:[%s1185_s6] sm:$0xff]  }
  0xaf   :  { %750 = vmatmul.mubr.msk.bf16.vlgmr.msra.gmra.mxu1 %vm94_vm0, %v128_v42 }
  0xb0   :  { %820 = vmatpush3.bf16.msra.mxu1 %v854_v41  ;;  %827 = vmatprep.mubr.msk.bf16.mxu1 %vm922_vm1, %v921_v18 }
  0xb1   :  { %821 = vmatprep.subr.bf16.mxu1 %v921_v18 }
  0xb4   :  { %822 = vmatpush3.bf16.msra.mxu1 %v855_v43 }
  0xb5   :  { %823 = vmatprep.subr.bf16.mxu1 %v921_v18 }
  0xb8   :  { %824 = vmatpush3.bf16.msra.mxu1 %v856_v44 }
  0xb9   :  { %825 = vmatprep.subr.bf16.mxu1 %v921_v18 }
  0xbc   :  { %826 = vmatpush3.bf16.msra.mxu1 %v857_v45 }
  0xbd   :  { %831 = vmatprep.subr.bf16.mxu1 %v921_v18 }
  0xbf   :  { %828 = vmatmul.mubr.msk.bf16.vlgmr.msra.gmra.mxu1 %vm94_vm0, %v128_v42 }
  0xc0   :  { %835 = vmatprep.mubr.msk.bf16.mxu1 %vm922_vm1, %v921_v18  ;;  %832 = vmatpush3.bf16.msra.mxu1 %v871_v33 }
  0xc1   :  { %833 = vmatprep.subr.bf16.mxu1 %v921_v18  ;;  %v872_v18 = vld [vmem:[%s1185_s6 + $0x8] sm:$0xff]  }
  0xc2   :  { %807 = vmatpush3.bf16.msra.mxu0 %v872_v18 }
  0xc3   :  { %808 = vmatprep.subr.bf16.mxu0 %v873_v39 }
  0xc4   :  { %834 = vmatpush3.bf16.msra.mxu1 %v874_v36 }
  0xc6   :  { %809 = vmatpush3.bf16.msra.mxu0 %v875_v40 }
 0x16f   :  { %v246_v47 = vpop.f32.mrf.mxu1 }
 0x170   :  { %v1039_v60 = vadd.f32 %v246_v47, %v133_v56 }
 0x171   :  { %v248_v50 = vpop.f32.mrf.mxu1 }
 0x172   :  { %v1037_v58 = vadd.f32 %v248_v50, %v137_v54  ;;  %v310_v5 = vmul.f32 %v1039_v60, %v1039_v60 }
 0x173   :  { %v250_v55 = vpop.f32.mrf.mxu1 }
 0x174   :  { %v311_v63 = vmul.f32 %v1037_v58, %v1037_v58  ;;  %v296_v2 = vadd.f32 %v1037_v58, %v1039_v60  ;;  %v1055_v6 = vadd.f32 %v250_v55, %v133_v56 }
 0x175   :  { %v252_v59 = vpop.f32.mrf.mxu1 }
 0x176   :  { %v1045_v0 = vadd.f32 %v252_v59, %v137_v54  ;;  %v316_v14 = vadd.f32 %v311_v63, %v310_v5  ;;  %v313_v17 = vmul.f32 %v1055_v6, %v1055_v6  ;;  %v86_v63 = vld [vmem:[%s1186_s4] sm:$0x7] }
 0x178   :  { %v314_v11 = vmul.f32 %v1045_v0, %v1045_v0  ;;  %v302_v13 = vadd.f32 %v1045_v0, %v1055_v6 }
 0x17a   :  { %v321_v22 = vadd.f32 %v314_v11, %v313_v17 }
 0x17f   :  { %v289_v61 = vpop.f32.mrf.mxu1 }
 0x180   :  { %v1041_v62 = vadd.f32 %v289_v61, %v141_v57 }
 0x181   :  { %v829_v1 = vpop.f32.mrf.mxu1 }
 0x182   :  { %v298_v3 = vsel %vm297_vm2, %v1041_v62, 0.0  ;;  %v312_v4 = vmul.f32 %v1041_v62, %v1041_v62  ;;  %v87_v1 = vld [vmem:[%s1187_s5] sm:$0x7] }
 0x183   :  { %v292_v7 = vpop.f32.mrf.mxu1  ;;  %v299_v8 = vadd.f32 %v298_v3, %v296_v2  ;;  %v354_v2 = vrot.slane %v86_v63, %v1027_v51  ;;  %v362_v3 = vrot.slane %v86_v63, %v1032_v53  ;;  %v380_v11 = vrot.slane %v87_v1, %v1025_v49 }
 0x184   :  { %v1057_v9 = vadd.f32 %v292_v7, %v141_v57  ;;  %v317_v10 = vsel %vm297_vm2, %v312_v4, 0.0  ;;  %v376_v17 = vrot.slane %v87_v1, %v1027_v51 }
 0x185   :  { %v830_v12 = vpop.f32.mrf.mxu1  ;;  %300 = vadd.xlane.f32.xlu0 %v299_v8  ;;  %v318_v20 = vadd.f32 %v317_v10, %v316_v14  ;;  %v358_v8 = vrot.slane %v86_v63, %v1025_v49  ;;  %v384_v14 = vrot.slane %v87_v1, %v1032_v53 }
 0x186   :  { %v303_v15 = vsel %vm297_vm2, %v1057_v9, 0.0  ;;  %v315_v16 = vmul.f32 %v1057_v9, %v1057_v9 }
 0x187   :  { %v304_v19 = vadd.f32 %v303_v15, %v302_v13 }
 0x188   :  { %v322_v21 = vsel %vm297_vm2, %v315_v16, 0.0 }
 0x189   :  { %305 = vadd.xlane.f32.xlu1 %v304_v19  ;;  %319 = vadd.xlane.f32.xlu0 %v318_v20  ;;  %v323_v23 = vadd.f32 %v322_v21, %v321_v22 }
 0x18d   :  { %324 = vadd.xlane.f32.xlu1 %v323_v23 }
 0x20e   :  { %v301_v41 = vpop.xlane.xlu0 %300 }
 0x20f   :  { %v308_v42 = vmul.f32 0.0034722222, %v301_v41 }
 0x211   :  { %v328_v46 = vmul.f32 %v308_v42, %v308_v42  ;;  %v334_v4 = vsub.f32 %v1039_v60, %v308_v42  ;;  %v335_v5 = vsub.f32 %v1037_v58, %v308_v42  ;;  %v336_v7 = vsub.f32 %v1041_v62, %v308_v42 }
 0x212   :  { %v306_v43 = vpop.xlane.xlu1 %305  ;;  %v320_v44 = vpop.xlane.xlu0 %319 }
 0x213   :  { %v309_v45 = vmul.f32 0.0034722222, %v306_v43  ;;  %v326_v47 = vmul.f32 0.0034722222, %v320_v44 }
 0x215   :  { %v330_v48 = vsub.f32 %v326_v47, %v328_v46  ;;  %v329_v54 = vmul.f32 %v309_v45, %v309_v45  ;;  %v338_v16 = vsub.f32 %v1045_v0, %v309_v45  ;;  %v339_v60 = vsub.f32 %v1057_v9, %v309_v45 }
 0x216   :  { %v325_v50 = vpop.xlane.xlu1 %324  ;;  %v337_v21 = vsub.f32 %v1055_v6, %v309_v45 }
 0x217   :  { %v332_v52 = vmax.f32 %v330_v48, 0.0  ;;  %v327_v55 = vmul.f32 0.0034722222, %v325_v50 }
 0x219   :  { %v340_v56 = vadd.f32 1e-05, %v332_v52  ;;  %v331_v57 = vsub.f32 %v327_v55, %v329_v54 }
 0x21b   :  { %880 = vrsqrt.f32 %v340_v56  ;;  %v333_v59 = vmax.f32 %v331_v57, 0.0 }
 0x21d   :  { %v341_v61 = vadd.f32 1e-05, %v333_v59 }
 0x21f   :  { %882 = vrsqrt.f32 %v341_v61 }
 0x228   :  { %v881_v10 = vpop.eup %880 }
 0x229   :  { %v345_v12 = vmul.f32 %v881_v10, %v335_v5  ;;  %v346_v13 = vmul.f32 %v881_v10, %v336_v7  ;;  %v344_v15 = vmul.f32 %v881_v10, %v334_v4 }
 0x22b   :  { %v367_v19 = vmul.f32 %v358_v8, %v345_v12  ;;  %v368_v58 = vmul.f32 %v362_v3, %v346_v13  ;;  %v366_v20 = vmul.f32 %v354_v2, %v344_v15 }
 0x22c   :  { %v883_v62 = vpop.eup %882 }
 0x22d   :  { %v348_v22 = vmul.f32 %v883_v62, %v338_v16  ;;  %v349_v23 = vmul.f32 %v883_v62, %v339_v60  ;;  %v1144_v49 = vadd.f32 %v380_v11, %v367_v19  ;;  %v1146_v24 = vadd.f32 %v384_v14, %v368_v58 }
 0x22e   :  { %v347_v53 = vmul.f32 %v883_v62, %v337_v21  ;;  %v1148_v25 = vadd.f32 %v376_v17, %v366_v20 }
 0x22f   :  { %v370_v0 = vmul.f32 %v358_v8, %v348_v22  ;;  %v371_v26 = vmul.f32 %v362_v3, %v349_v23  ;;  %v395_v51 = vmin.f32 %v1144_v49, 20.0  ;;  %v396_v9 = vmin.f32 %v1146_v24, 20.0 }
 0x230   :  { %v369_v27 = vmul.f32 %v354_v2, %v347_v53  ;;  %v394_v28 = vmin.f32 %v1148_v25, 20.0 }
 0x231   :  { %v392_v29 = vadd.f32 %v380_v11, %v370_v0  ;;  %v393_v6 = vadd.f32 %v384_v14, %v371_v26  ;;  %v402_v30 = vmul.f32 1.442695, %v395_v51  ;;  %v404_v31 = vmul.f32 1.442695, %v396_v9 }
 0x232   :  { %v1153_v32 = vadd.f32 %v376_v17, %v369_v27  ;;  %v400_v33 = vmul.f32 1.442695, %v394_v28 }
 0x233   :  { %v398_v34 = vmin.f32 %v392_v29, 20.0  ;;  %v399_v35 = vmin.f32 %v393_v6, 20.0  ;;  %884 = vpow2.f32 %v402_v30 }
 0x234   :  { %886 = vpow2.f32 %v404_v31  ;;  %v397_v36 = vmin.f32 %v1153_v32, 20.0 }
 0x235   :  { %v408_v37 = vmul.f32 1.442695, %v398_v34  ;;  %v410_v38 = vmul.f32 1.442695, %v399_v35  ;;  %888 = vpow2.f32 %v400_v33 }
 0x236   :  { %v406_v18 = vmul.f32 1.442695, %v397_v36 }
 0x237   :  { %890 = vpow2.f32 %v408_v37 }
 0x238   :  { %892 = vpow2.f32 %v410_v38 }
 0x239   :  { %894 = vpow2.f32 %v406_v18 }
 0x240   :  { %v885_v39 = vpop.eup %884 }
 0x241   :  { %v887_v40 = vpop.eup %886  ;;  %v413_v41 = vadd.f32 1.0, %v885_v39 }
 0x242   :  { %v889_v42 = vpop.eup %888  ;;  %v414_v43 = vadd.f32 1.0, %v887_v40 }
 0x243   :  { %v419_v44 = vmul.f32 %v413_v41, %v413_v41  ;;  %v412_v45 = vadd.f32 1.0, %v889_v42 }
 0x244   :  { %v891_v46 = vpop.eup %890  ;;  %v420_v47 = vmul.f32 %v414_v43, %v414_v43 }
 0x245   :  { %v893_v48 = vpop.eup %892  ;;  %v416_v50 = vadd.f32 1.0, %v891_v46  ;;  %v437_v52 = vadd.f32 1.0, %v419_v44  ;;  %v418_v54 = vmul.f32 %v412_v45, %v412_v45  ;;  %v753_v7 = vadd.f32 -1.0, %v419_v44 }
 0x246   :  { %v895_v55 = vpop.eup %894  ;;  %v417_v56 = vadd.f32 1.0, %v893_v48  ;;  %v438_v57 = vadd.f32 1.0, %v420_v47  ;;  %v754_v10 = vadd.f32 -1.0, %v420_v47 }
 0x247   :  { %v422_v59 = vmul.f32 %v416_v50, %v416_v50  ;;  %v415_v61 = vadd.f32 1.0, %v895_v55  ;;  %896 = vrcp.f32 %v437_v52  ;;  %v436_v3 = vadd.f32 1.0, %v418_v54 }
 0x248   :  { %v423_v63 = vmul.f32 %v417_v56, %v417_v56  ;;  %898 = vrcp.f32 %v438_v57  ;;  %v752_v13 = vadd.f32 -1.0, %v418_v54  ;;  %v431_v16 = vmul.f32 %v753_v7, %v1144_v49 }
 0x249   :  { %v440_v1 = vadd.f32 1.0, %v422_v59  ;;  %v421_v2 = vmul.f32 %v415_v61, %v415_v61  ;;  %v756_v8 = vadd.f32 -1.0, %v422_v59  ;;  %v432_v19 = vmul.f32 %v754_v10, %v1146_v24 }
 0x24a   :  { %v441_v4 = vadd.f32 1.0, %v423_v63  ;;  %v757_v11 = vadd.f32 -1.0, %v423_v63  ;;  %v430_v0 = vmul.f32 %v752_v13, %v1148_v25 }
 0x24b   :  { %900 = vrcp.f32 %v440_v1  ;;  %v439_v5 = vadd.f32 1.0, %v421_v2  ;;  %v755_v14 = vadd.f32 -1.0, %v421_v2  ;;  %v434_v17 = vmul.f32 %v756_v8, %v392_v29  ;;  %v778_v8 = vld [vmem:[%s1189_s8] ss:$0 sm:$0xff] }
 0x24c   :  { %902 = vrcp.f32 %v441_v4  ;;  %v435_v58 = vmul.f32 %v757_v11, %v393_v6 }
 0x24d   :  { %904 = vrcp.f32 %v436_v3  ;;  %v433_v26 = vmul.f32 %v755_v14, %v1153_v32 }
 0x24e   :  { %906 = vrcp.f32 %v439_v5  ;;  %v777_v5 = vld [vmem:[%s1188_s7] ss:$0 sm:$0xff] }
 0x254   :  { %v897_v12 = vpop.eup %896 }
 0x255   :  { %v899_v15 = vpop.eup %898  ;;  %v449_v62 = vmul.f32 %v897_v12, %v431_v16 }
 0x256   :  { %v450_v23 = vmul.f32 %v899_v15, %v432_v19 }
 0x258   :  { %v901_v60 = vpop.eup %900 }
 0x259   :  { %v903_v20 = vpop.eup %902  ;;  %v452_v21 = vmul.f32 %v901_v60, %v434_v17 }
 0x25a   :  { %v905_v22 = vpop.eup %904  ;;  %v453_v53 = vmul.f32 %v903_v20, %v435_v58 }
 0x25b   :  { %v907_v51 = vpop.eup %906  ;;  %v455_v9 = vpack.c.bf16 %v452_v21, %v449_v62  ;;  %v448_v28 = vmul.f32 %v905_v22, %v430_v0 }
 0x25c   :  { %v456_v27 = vpack.c.bf16 %v453_v53, %v450_v23  ;;  %v451_v49 = vmul.f32 %v907_v51, %v433_v26 }
 0x25d   :  { %600 = vmatprep.mubr.bf16.mxu0 %v455_v9  ;;  %v786_v9 = vld [vmem:[%s1190_s1] sm:$0xff]  }
 0x25e   :  { %836 = vmatmul.mubr.msk.bf16.vlgmr.msra.gmra.mxu1 %vm297_vm2, %v456_v27  ;;  %v454_v24 = vpack.c.bf16 %v451_v49, %v448_v28  ;;  %v787_v28 = vunpack.c.l.bf16 %v786_v9 }
 0x260   :  { %601 = vmatmul.mubr.bf16.vlgmr.msra.gmra.mxu0 %v454_v24 }
 0x31e   :  { %v643_v29 = vpop.f32.mrf.mxu1 }
 0x320   :  { %v810_v6 = vpop.f32.mrf.mxu0  ;;  %v837_v30 = vpop.f32.mrf.mxu1 }
 0x322   :  { %v811_v31 = vpop.f32.mrf.mxu0  ;;  %v646_v33 = vpop.f32.mrf.mxu1 }
 0x323   :  { %v812_v34 = vadd.f32 %v811_v31, %v810_v6  ;;  %v788_v31 = vunpack.c.h.bf16 %v786_v9 }
 0x324   :  { %v813_v35 = vpop.f32.mrf.mxu0  ;;  %v838_v25 = vpop.f32.mrf.mxu1 }
 0x325   :  { %v644_v36 = vadd.f32 %v812_v34, %v643_v29 }
 0x326   :  { %v814_v32 = vpop.f32.mrf.mxu0 }
 0x327   :  { %v815_v37 = vadd.f32 %v814_v32, %v813_v35  ;;  %v650_v38 = vsel %vm297_vm2, %v644_v36, 0.0  ;;  %v659_v18 = vmul.f32 %v644_v36, %v644_v36 }
 0x328   :  { %651 = vadd.xlane.f32.xlu0 %v650_v38 }
 0x329   :  { %v647_v39 = vadd.f32 %v815_v37, %v646_v33  ;;  %v661_v41 = vsel %vm297_vm2, %v659_v18, 0.0 }
 0x32b   :  { %v653_v40 = vsel %vm297_vm2, %v647_v39, 0.0  ;;  %v660_v42 = vmul.f32 %v647_v39, %v647_v39 }
 0x32c   :  { %654 = vadd.xlane.f32.xlu1 %v653_v40  ;;  %662 = vadd.xlane.f32.xlu0 %v661_v41 }
 0x32d   :  { %v664_v43 = vsel %vm297_vm2, %v660_v42, 0.0 }
 0x330   :  { %665 = vadd.xlane.f32.xlu1 %v664_v43 }
 0x3b1   :  { %v652_v44 = vpop.xlane.xlu0 %651 }
 0x3b2   :  { %v657_v45 = vmul.f32 0.03125, %v652_v44 }
 0x3b4   :  { %v669_v48 = vmul.f32 %v657_v45, %v657_v45  ;;  %v675_v3 = vsub.f32 %v644_v36, %v657_v45 }
 0x3b5   :  { %v655_v46 = vpop.xlane.xlu1 %654  ;;  %v663_v47 = vpop.xlane.xlu0 %662 }
 0x3b6   :  { %v658_v50 = vmul.f32 0.03125, %v655_v46  ;;  %v667_v52 = vmul.f32 0.03125, %v663_v47 }
 0x3b8   :  { %v671_v54 = vsub.f32 %v667_v52, %v669_v48  ;;  %v670_v56 = vmul.f32 %v658_v50, %v658_v50  ;;  %v676_v10 = vsub.f32 %v647_v39, %v658_v50 }
 0x3b9   :  { %v666_v55 = vpop.xlane.xlu1 %665 }
 0x3ba   :  { %v673_v57 = vmax.f32 %v671_v54, 0.0  ;;  %v668_v59 = vmul.f32 0.03125, %v666_v55 }
 0x3bc   :  { %v677_v61 = vadd.f32 1e-05, %v673_v57  ;;  %v672_v63 = vsub.f32 %v668_v59, %v670_v56 }
 0x3be   :  { %908 = vrsqrt.f32 %v677_v61  ;;  %v674_v1 = vmax.f32 %v672_v63, 0.0 }
 0x3c0   :  { %v678_v2 = vadd.f32 1e-05, %v674_v1 }
 0x3c2   :  { %910 = vrsqrt.f32 %v678_v2 }
 0x3cb   :  { %v909_v4 = vpop.eup %908 }
 0x3cc   :  { %v681_v7 = vmul.f32 %v909_v4, %v675_v3 }
 0x3ce   :  { %v689_v11 = vmul.f32 %v777_v5, %v681_v7 }
 0x3cf   :  { %v911_v12 = vpop.eup %910 }
 0x3d0   :  { %v697_v13 = vadd.f32 %v778_v8, %v689_v11  ;;  %v682_v14 = vmul.f32 %v911_v12, %v676_v10 }
 0x3d2   :  { %v699_v15 = vmin.f32 %v697_v13, 20.0  ;;  %v690_v16 = vmul.f32 %v777_v5, %v682_v14 }
 0x3d4   :  { %v701_v17 = vmul.f32 1.442695, %v699_v15  ;;  %v698_v60 = vadd.f32 %v778_v8, %v690_v16 }
 0x3d6   :  { %912 = vpow2.f32 %v701_v17  ;;  %v700_v19 = vmin.f32 %v698_v60, 20.0 }
 0x3d8   :  { %v703_v58 = vmul.f32 1.442695, %v700_v19 }
 0x3da   :  { %914 = vpow2.f32 %v703_v58 }
 0x3e3   :  { %v913_v20 = vpop.eup %912 }
 0x3e4   :  { %v705_v62 = vadd.f32 1.0, %v913_v20 }
 0x3e6   :  { %v707_v21 = vmul.f32 %v705_v62, %v705_v62 }
 0x3e7   :  { %v915_v22 = vpop.eup %914 }
 0x3e8   :  { %v713_v23 = vadd.f32 1.0, %v707_v21  ;;  %v706_v53 = vadd.f32 1.0, %v915_v22  ;;  %v779_v51 = vadd.f32 -1.0, %v707_v21 }
 0x3ea   :  { %916 = vrcp.f32 %v713_v23  ;;  %v708_v0 = vmul.f32 %v706_v53, %v706_v53  ;;  %v711_v27 = vmul.f32 %v779_v51, %v697_v13 }
 0x3ec   :  { %v714_v26 = vadd.f32 1.0, %v708_v0  ;;  %v780_v49 = vadd.f32 -1.0, %v708_v0 }
 0x3ee   :  { %918 = vrcp.f32 %v714_v26  ;;  %v712_v30 = vmul.f32 %v780_v49, %v698_v60 }
 0x3f7   :  { %v917_v24 = vpop.eup %916 }
 0x3f8   :  { %v717_v29 = vmul.f32 %v917_v24, %v711_v27 }
 0x3fa   :  { %v723_v6 = vmul.f32 %v787_v28, %v717_v29 }
 0x3fb   :  { %v919_v33 = vpop.eup %918 }
 0x3fc   :  { %v725_v34 = vsel %vm297_vm2, %v723_v6, 0.0  ;;  %v718_v35 = vmul.f32 %v919_v33, %v712_v30 }
 0x3fd   :  { %726 = vadd.xlane.f32.xlu0 %v725_v34 }
 0x3fe   :  { %v724_v25 = vmul.f32 %v788_v31, %v718_v35 }
 0x400   :  { %v728_v36 = vsel %vm297_vm2, %v724_v25, 0.0 }
 0x401   :  { %729 = vadd.xlane.f32.xlu1 %v728_v36 }
 0x486   :  { %v727_v32 = vpop.xlane.xlu0 %726 }
 0x487   :  { %732 = vst.msk [vmem:[%s1191_s9] sm:$0xff] %vm731_vm3, %v727_v32 }
 0x48a   :  { %v730_v37 = vpop.xlane.xlu1 %729 }
 0x48b   :  { %733 = vst.msk [vmem:[%s1191_s9 + $0x8] sm:$0xff] %vm731_vm3, %v730_v37 }

</bundles_post_ra>
